<compile_context>
chip_gen: v6e
topology: v6e:2x2x1
jax: 0.10.0
libtpu: 0.0.40
codegen_flags: <defaults>
</compile_context>

<pallas_src>
import functools

import jax
import jax.numpy as jnp
from jax.experimental import pallas as pl
from jax.experimental.pallas import tpu as pltpu


def _dice_count_kernel(out_ref, tgt_ref, score_ref, inter_acc, union_acc,
                       *, S, tS, C):
    s = pl.program_id(1)
    n_s = pl.num_programs(1)

    @pl.when(s == 0)
    def _():
        inter_acc[...] = jnp.zeros_like(inter_acc)
        union_acc[...] = jnp.zeros_like(union_acc)

    x = out_ref[0]                       # (C, tS) float32, spatial on lanes
    t = tgt_ref[0]                       # (1, tS) int32

    # class id per sublane row
    c_iota = jax.lax.broadcasted_iota(jnp.int32, (C, tS), 0)

    # argmax over the class (sublane) axis, first occurrence on ties
    max_val = jnp.max(x, axis=0, keepdims=True)                       # (1, tS)
    pred_idx = jnp.min(jnp.where(x == max_val, c_iota, jnp.int32(C)),
                       axis=0, keepdims=True)                         # (1, tS)

    pred_oh = (c_iota == pred_idx)                                    # (C, tS) bool
    tgt_oh = (c_iota == t)                                            # (C, tS) bool

    if S % tS != 0:
        # mask out the ragged tail of the last spatial tile
        pos = s * tS + jax.lax.broadcasted_iota(jnp.int32, (1, tS), 1)
        valid = pos < S                                               # (1, tS)
        pred_oh = jnp.logical_and(pred_oh, valid)
        tgt_oh = jnp.logical_and(tgt_oh, valid)

    one = jnp.int32(1)
    zero = jnp.int32(0)
    inter_p = jnp.sum(jnp.where(jnp.logical_and(pred_oh, tgt_oh), one, zero),
                      axis=1, keepdims=True)                          # (C, 1)
    union_p = jnp.sum(jnp.where(pred_oh, one, zero)
                      + jnp.where(tgt_oh, one, zero),
                      axis=1, keepdims=True)                          # (C, 1)

    inter_acc[...] += inter_p
    union_acc[...] += union_p

    @pl.when(s == n_s - 1)
    def _():
        inter = inter_acc[...].astype(jnp.float32)
        union = union_acc[...].astype(jnp.float32)
        score_ref[0] = (2.0 * inter) / (union + 1e-10)                # (C, 1)


def dice(output, target, *, tile_bytes=2 * 1024 * 1024):
    """output: (N, C, *spatial) float; target: (N, 1, *spatial) int.

    Returns per-class Dice scores, shape (C,) float32, matching the PyTorch
    `Dice.forward` semantics.
    """
    N, C = output.shape[0], output.shape[1]
    S = 1
    for d in output.shape[2:]:
        S *= d

    # Free reshapes only (contiguous NCHW -> N,C,S); no host-side transpose.
    out_ncs = output.reshape(N, C, S).astype(jnp.float32)
    tgt_n1s = target.reshape(N, 1, S).astype(jnp.int32)

    # Spatial tile: lane-dense, multiple of 128, sized so the (C, tS) f32
    # block stays ~2 MiB (double-buffered comfortably inside the default
    # scoped VMEM on v5e / v6e / v7x).
    if S * C * 4 <= tile_bytes:
        tS = S
    else:
        tS = max(128, (tile_bytes // (4 * C) // 128) * 128)
        tS = min(tS, S)
    n_tiles = pl.cdiv(S, tS)

    kernel = functools.partial(_dice_count_kernel, S=S, tS=tS, C=C)

    per_sample = pl.pallas_call(
        kernel,
        out_shape=jax.ShapeDtypeStruct((N, C, 1), jnp.float32),
        grid_spec=pltpu.PrefetchScalarGridSpec(
            num_scalar_prefetch=0,
            grid=(N, n_tiles),
            in_specs=[
                pl.BlockSpec((1, C, tS), lambda n, s: (n, 0, s)),
                pl.BlockSpec((1, 1, tS), lambda n, s: (n, 0, s)),
            ],
            out_specs=pl.BlockSpec((1, C, 1), lambda n, s: (n, 0, 0)),
            scratch_shapes=[
                pltpu.VMEM((C, 1), jnp.int32),   # intersection counts
                pltpu.VMEM((C, 1), jnp.int32),   # pred_sum + tgt_sum counts
            ],
        ),
        compiler_params=pltpu.CompilerParams(
            dimension_semantics=("parallel", "arbitrary")),
        cost_estimate=pl.CostEstimate(
            flops=6 * N * S * C,
            transcendentals=0,
            bytes_accessed=N * S * (4 * C + 4) + N * C * 4,
        ),
    )(out_ncs, tgt_n1s)

    # tiny glue: score.mean(dim=0)
    return per_sample.reshape(N, C).mean(axis=0)


if __name__ == "__main__":
    key = jax.random.PRNGKey(0)
    k1, k2 = jax.random.split(key)
    N, C, H, W = 2, 4, 16, 16
    output = jax.random.normal(k1, (N, C, H, W), dtype=jnp.float32)
    target = jax.random.randint(k2, (N, 1, H, W), 0, C, dtype=jnp.int32)

    score = dice(output, target)
    jax.block_until_ready(score)

    # pure-JAX reference for sanity
    pred = jnp.argmax(output, axis=1)                       # (N, H, W)
    pred_oh = jax.nn.one_hot(pred, C, axis=1)               # (N, C, H, W)
    tgt_oh = jax.nn.one_hot(target[:, 0], C, axis=1)        # (N, C, H, W)
    inter = 2.0 * (pred_oh * tgt_oh).sum(axis=(2, 3))
    union = pred_oh.sum(axis=(2, 3)) + tgt_oh.sum(axis=(2, 3))
    ref = (inter / (union + 1e-10)).mean(axis=0)
    assert jnp.allclose(score, ref, atol=1e-5), (score, ref)

    print("KERNEL_OK")
</pallas_src>

<mosaic_0001>
module attributes {stable_mosaic.version = 11 : i64} {
  func.func @_dice_count_kernel(%arg0: i32, %arg1: i32, %arg2: memref<1x4x256xf32, #tpu.memory_space<vmem>>, %arg3: memref<1x1x256xi32, #tpu.memory_space<vmem>>, %arg4: memref<1x4x1xf32, #tpu.memory_space<vmem>>, %arg5: memref<4x1xi32, #tpu.memory_space<vmem>>, %arg6: memref<4x1xi32, #tpu.memory_space<vmem>>) attributes {dimension_semantics = [#tpu.dimension_semantics<parallel>, #tpu.dimension_semantics<arbitrary>], iteration_bounds = array<i64: 2, 1>, scalar_prefetch = 0 : i64, scratch_operands = 2 : i64, tpu.core_type = #tpu.core_type<tc>, window_params = [{transform_indices = @transform_0, window_bounds = array<i64: 1, 4, 256>}, {transform_indices = @transform_1, window_bounds = array<i64: 1, 1, 256>}, {transform_indices = @transform_2, window_bounds = array<i64: 1, 4, 1>}]} {
    %c0_i32 = arith.constant 0 : i32
    %0 = arith.cmpi eq, %arg1, %c0_i32 : i32
    %1 = arith.extui %0 : i1 to i32
    %c0_i32_0 = arith.constant 0 : i32
    %2 = arith.cmpi ne, %1, %c0_i32_0 : i32
    scf.if %2 {
      %c0_i32_24 = arith.constant 0 : i32
      %44 = vector.broadcast %c0_i32_24 : i32 to vector<4x1xi32>
      %c0_25 = arith.constant 0 : index
      %c0_26 = arith.constant 0 : index
      %45 = vector.load %arg5[%c0_25, %c0_26] : memref<4x1xi32, #tpu.memory_space<vmem>>, vector<4x1xi32>
      tpu.vector_store %arg5[%c0_25, %c0_26], %44 {strides = array<i32>} : memref<4x1xi32, #tpu.memory_space<vmem>>, vector<4x1xi32>,
      %c0_i32_27 = arith.constant 0 : i32
      %46 = vector.broadcast %c0_i32_27 : i32 to vector<4x1xi32>
      %c0_28 = arith.constant 0 : index
      %c0_29 = arith.constant 0 : index
      %47 = vector.load %arg6[%c0_28, %c0_29] : memref<4x1xi32, #tpu.memory_space<vmem>>, vector<4x1xi32>
      tpu.vector_store %arg6[%c0_28, %c0_29], %46 {strides = array<i32>} : memref<4x1xi32, #tpu.memory_space<vmem>>, vector<4x1xi32>,
    } else {
    }
    %c0 = arith.constant 0 : index
    %c0_1 = arith.constant 0 : index
    %c0_2 = arith.constant 0 : index
    %3 = vector.load %arg2[%c0, %c0_1, %c0_2] : memref<1x4x256xf32, #tpu.memory_space<vmem>>, vector<1x4x256xf32>
    %4 = vector.shape_cast %3 : vector<1x4x256xf32> to vector<4x256xf32>
    %c0_3 = arith.constant 0 : index
    %c0_4 = arith.constant 0 : index
    %c0_5 = arith.constant 0 : index
    %5 = vector.load %arg3[%c0_3, %c0_4, %c0_5] : memref<1x1x256xi32, #tpu.memory_space<vmem>>, vector<1x1x256xi32>
    %6 = vector.shape_cast %5 : vector<1x1x256xi32> to vector<1x256xi32>
    %7 = tpu.iota {dimensions = array<i32: 0>} : vector<4x256xi32>
    %cst = arith.constant dense<0xFF800000> : vector<256xf32>
    %8 = vector.multi_reduction <maximumf>, %4, %cst [0] : vector<4x256xf32> to vector<256xf32>
    %9 = vector.shape_cast %8 : vector<256xf32> to vector<1x256xf32>
    %10 = vector.broadcast %9 : vector<1x256xf32> to vector<4x256xf32>
    %11 = arith.cmpf oeq, %4, %10 : vector<4x256xf32>
    %c4_i32 = arith.constant 4 : i32
    %12 = vector.broadcast %c4_i32 : i32 to vector<4x256xi32>
    %13 = arith.select %11, %7, %12 : vector<4x256xi1>, vector<4x256xi32>
    %cst_6 = arith.constant dense<2147483647> : vector<256xi32>
    %14 = vector.multi_reduction <minsi>, %13, %cst_6 [0] : vector<4x256xi32> to vector<256xi32>
    %15 = vector.shape_cast %14 : vector<256xi32> to vector<1x256xi32>
    %16 = vector.broadcast %15 : vector<1x256xi32> to vector<4x256xi32>
    %17 = arith.cmpi eq, %7, %16 : vector<4x256xi32>
    %18 = vector.broadcast %6 : vector<1x256xi32> to vector<4x256xi32>
    %19 = arith.cmpi eq, %7, %18 : vector<4x256xi32>
    %20 = arith.andi %17, %19 : vector<4x256xi1>
    %c1_i32 = arith.constant 1 : i32
    %c0_i32_7 = arith.constant 0 : i32
    %21 = vector.broadcast %c1_i32 : i32 to vector<4x256xi32>
    %22 = vector.broadcast %c0_i32_7 : i32 to vector<4x256xi32>
    %23 = arith.select %20, %21, %22 : vector<4x256xi1>, vector<4x256xi32>
    %cst_8 = arith.constant dense<0> : vector<4xi32>
    %24 = vector.multi_reduction <add>, %23, %cst_8 [1] : vector<4x256xi32> to vector<4xi32>
    %25 = vector.shape_cast %24 : vector<4xi32> to vector<4x1xi32>
    %c1_i32_9 = arith.constant 1 : i32
    %c0_i32_10 = arith.constant 0 : i32
    %26 = vector.broadcast %c1_i32_9 : i32 to vector<4x256xi32>
    %27 = vector.broadcast %c0_i32_10 : i32 to vector<4x256xi32>
    %28 = arith.select %17, %26, %27 : vector<4x256xi1>, vector<4x256xi32>
    %c1_i32_11 = arith.constant 1 : i32
    %c0_i32_12 = arith.constant 0 : i32
    %29 = vector.broadcast %c1_i32_11 : i32 to vector<4x256xi32>
    %30 = vector.broadcast %c0_i32_12 : i32 to vector<4x256xi32>
    %31 = arith.select %19, %29, %30 : vector<4x256xi1>, vector<4x256xi32>
    %32 = arith.addi %28, %31 : vector<4x256xi32>
    %cst_13 = arith.constant dense<0> : vector<4xi32>
    %33 = vector.multi_reduction <add>, %32, %cst_13 [1] : vector<4x256xi32> to vector<4xi32>
    %34 = vector.shape_cast %33 : vector<4xi32> to vector<4x1xi32>
    %c0_14 = arith.constant 0 : index
    %c0_15 = arith.constant 0 : index
    %35 = vector.load %arg5[%c0_14, %c0_15] : memref<4x1xi32, #tpu.memory_space<vmem>>, vector<4x1xi32>
    %36 = arith.addi %35, %25 : vector<4x1xi32>
    %c0_16 = arith.constant 0 : index
    %c0_17 = arith.constant 0 : index
    %37 = vector.load %arg5[%c0_16, %c0_17] : memref<4x1xi32, #tpu.memory_space<vmem>>, vector<4x1xi32>
    tpu.vector_store %arg5[%c0_16, %c0_17], %36 {strides = array<i32>} : memref<4x1xi32, #tpu.memory_space<vmem>>, vector<4x1xi32>,
    %c0_18 = arith.constant 0 : index
    %c0_19 = arith.constant 0 : index
    %38 = vector.load %arg6[%c0_18, %c0_19] : memref<4x1xi32, #tpu.memory_space<vmem>>, vector<4x1xi32>
    %39 = arith.addi %38, %34 : vector<4x1xi32>
    %c0_20 = arith.constant 0 : index
    %c0_21 = arith.constant 0 : index
    %40 = vector.load %arg6[%c0_20, %c0_21] : memref<4x1xi32, #tpu.memory_space<vmem>>, vector<4x1xi32>
    tpu.vector_store %arg6[%c0_20, %c0_21], %39 {strides = array<i32>} : memref<4x1xi32, #tpu.memory_space<vmem>>, vector<4x1xi32>,
    %c0_i32_22 = arith.constant 0 : i32
    %41 = arith.cmpi eq, %arg1, %c0_i32_22 : i32
    %42 = arith.extui %41 : i1 to i32
    %c0_i32_23 = arith.constant 0 : i32
    %43 = arith.cmpi ne, %42, %c0_i32_23 : i32
    scf.if %43 {
      %c0_24 = arith.constant 0 : index
      %c0_25 = arith.constant 0 : index
      %44 = vector.load %arg5[%c0_24, %c0_25] : memref<4x1xi32, #tpu.memory_space<vmem>>, vector<4x1xi32>
      %45 = arith.sitofp %44 : vector<4x1xi32> to vector<4x1xf32>
      %c0_26 = arith.constant 0 : index
      %c0_27 = arith.constant 0 : index
      %46 = vector.load %arg6[%c0_26, %c0_27] : memref<4x1xi32, #tpu.memory_space<vmem>>, vector<4x1xi32>
      %47 = arith.sitofp %46 : vector<4x1xi32> to vector<4x1xf32>
      %cst_28 = arith.constant 2.000000e+00 : f32
      %48 = vector.broadcast %cst_28 : f32 to vector<4x1xf32>
      %49 = arith.mulf %48, %45 : vector<4x1xf32>
      %cst_29 = arith.constant 1.000000e-10 : f32
      %50 = vector.broadcast %cst_29 : f32 to vector<4x1xf32>
      %51 = arith.addf %47, %50 : vector<4x1xf32>
      %52 = arith.divf %49, %51 : vector<4x1xf32>
      %c0_30 = arith.constant 0 : index
      %c0_31 = arith.constant 0 : index
      %c0_32 = arith.constant 0 : index
      %53 = vector.load %arg4[%c0_30, %c0_31, %c0_32] : memref<1x4x1xf32, #tpu.memory_space<vmem>>, vector<1x4x1xf32>
      %54 = vector.shape_cast %53 : vector<1x4x1xf32> to vector<4x1xf32>
      %55 = vector.shape_cast %52 : vector<4x1xf32> to vector<1x4x1xf32>
      tpu.vector_store %arg4[%c0_30, %c0_31, %c0_32], %55 {strides = array<i32>} : memref<1x4x1xf32, #tpu.memory_space<vmem>>, vector<1x4x1xf32>,
    } else {
    }
    return
  }
  func.func @transform_0(%arg0: i32, %arg1: i32) -> (i32, i32, i32) {
    %c0_i32 = arith.constant 0 : i32
    %c0_i32_0 = arith.constant 0 : i32
    return %arg0, %c0_i32, %arg1 : i32, i32, i32
  }
  func.func @transform_1(%arg0: i32, %arg1: i32) -> (i32, i32, i32) {
    %c0_i32 = arith.constant 0 : i32
    %c0_i32_0 = arith.constant 0 : i32
    return %arg0, %c0_i32, %arg1 : i32, i32, i32
  }
  func.func @transform_2(%arg0: i32, %arg1: i32) -> (i32, i32, i32) {
    %c0_i32 = arith.constant 0 : i32
    %c0_i32_0 = arith.constant 0 : i32
    %c0_i32_1 = arith.constant 0 : i32
    return %arg0, %c0_i32, %c0_i32_0 : i32, i32, i32
  }
}

</mosaic_0001>

<bundles_post_ra>
// kernel: tpu_custom_call.1
= control target key start
LH: loop header
LB: loop body
LE: loop exit
PB: predicated region body
PF: predicated region fallthrough
CT: control target
= control target key end

     0   :  { %7 = vsyncpa [#allocation5], 0  ;;  %s814_s0 = inlined_call_operand.hbm [shape: f32[2,4,256], index: 0, kind: input, shape index: {}]   ;;  %s815_s1 = inlined_call_operand.hbm [shape: s32[2,1,256], index: 1, kind: input, shape index: {}]   ;;  %s816_s2 = inlined_call_operand.vmem [shape: f32[2,4,1], index: 2, kind: output, shape index: {}]  }
   0x1   :  { %9 = vsyncpa [#allocation5 + $0x1], 0 }
   0x2   :  { %10 = vsyncpa [#allocation7], 0 }
   0x3   :  { %12 = vsyncpa [#allocation7 + $0x1], 0  ;;  %s670_s9 = smov 0   ;;  %s672_s10 = smov 0  }
   0x4   :  { %s674_s11 = smov 0   ;;  %s676_s12 = smov 0  }
   0x5   :  { %s678_s13 = smov 0   ;;  %s680_s14 = smov 0  }
   0x6 LB: > { %s456_s15 = sadd.s32 4294967295, %s649_s14   ;;  %s30_s16 = sadd.s32 1, %s645_s13  ;;  %s649_s14 = sphi %s680_s14, %s18_s14   ;;  %s645_s13 = sphi %s678_s13, %s825_s13   ;;  %s641_s12 = sphi %s676_s12, %s824_s12   ;;  %s637_s11 = sphi %s674_s11, %s823_s11   ;;  %s633_s10 = sphi %s672_s10, %s822_s10   ;;  %s629_s9 = sphi %s670_s9, %s821_s9  }
   0x7   : > { %p32_p0 = scmp.ge.s32.totalorder %s30_s16, 2  ;;  %s39_s17 = sadd.s32 1, %s637_s11 }
   0x8   : > { %p46_p1 = scmp.ne.s32.totalorder %s637_s11, %s633_s10  ;;  %p47_p2 = scmp.eq.s32.totalorder %s649_s14, 0 }
   0x9   : > { %s827_s16 = smov (%p32_p0, %s30_s16), 0  ;;  %p52_p4 = scmp.ne.s32.totalorder %s633_s10, %s629_s9 }
   0xa   : > { %p706_p3 = por %p47_p2, %p46_p1  ;;  %s34_s19 = ssub.s32 %s645_s13, %s827_s16 }
   0xb   : > { %p53_p5 = scmp.eq.s32.totalorder %s456_s15, 0  ;;  %p37_p6 = scmp.eq.s32.totalorder %s34_s19, 0 }
   0xc   : > { %p485_p8 = scmp.lt.s32.totalorder %s649_s14, 2  ;;  %s722_s22 = sand.u32 1, %s637_s11  }
   0xd   : > { %p713_p7 = por %p53_p5, %p52_p4  ;;  %s472_s23 = sshll.u32 %s645_s13, 7 }
   0xe   : > { %s719_s21 = scalar_select %p37_p6, %s637_s11, %s39_s17  }
   0xf   : > { %s460_s24 = sshll.u32 %s722_s22, 3  ;;  %s142_s27 = scalar_lea.hbm %s814_s0, %s472_s23 }
  0x10   : > { %s134_s28 = scalar_lea.vmem [#allocation4], %s460_s24  ;;  %p731_p9 = pnand %p485_p8, %p706_p3 }
  0x11   : > { %s144_s29 = sshll.u32 %s134_s28, 4  ;;  %p466_p10 = scmp.ge.s32.totalorder %s649_s14, 1  ;;  %s145_s29 = int_to_ptr.vmem [resolvable:$true] %s144_s29 }
  0x12   : > { %p170_p11 = scmp.lt.s32.totalorder %s649_s14, 3  ;;  %s131_s3 = scalar_lea.sflag [#allocation5], %s722_s22 }
  0x13   : > { %p541_p12 = pneg %p731_p9  ;;  %s552_s4 = scalar_lea.vmem %s145_s29, 128 }
  0x14   : > { %p553_p13 = scmp.ne.s32.totalorder %s145_s29, %s552_s4  ;;  %s651_s5 = smov [#allocation4]  }
  0x15   : > { %s557_s6 = sshll.u32 %s651_s5, 4  ;;  %s558_s6 = int_to_ptr.vmem [resolvable:$false] %s557_s6 }
  0x16   : > { %p555_p0 = pnand %p553_p13, %p541_p12  ;;  %s559_s7 = scalar_lea.vmem %s558_s6, 256 }
  0x17   : > { %p560_p2 = scmp.lt.s32.totalorder %s145_s29, %s558_s6  ;;  %p561_p3 = scmp.lt.s32.totalorder %s559_s7, %s552_s4 }
  0x18   : > { %p556_p1 = pneg %p555_p0 }
  0x19   : > { %p562_p4 = por %p561_p3, %p560_p2 }
  0x1b   : > { %p563_p5 = pnand %p562_p4, %p556_p1 }
  0x1d   : > { %566 = shalt.err (!%p563_p5)
}
  0x1e   : > { %481 = dma.hbm_to_vmem [thread:$0]  (!%p731_p9), %s142_s27, 128, %s145_s29, %s131_s3  }
  0x1f   : > { %p749_p6 = pnand %p466_p10, %p170_p11  ;;  %s463_s9 = sshll.u32 %s722_s22, 1 }
  0x20   : > { %s473_s15 = sshll.u32 %s645_s13, 5  ;;  %s155_s23 = scalar_lea.vmem [#allocation6], %s463_s9 }
  0x21   : > { %s163_s19 = scalar_lea.hbm %s815_s1, %s473_s15  ;;  %s165_s24 = sshll.u32 %s155_s23, 4  ;;  %s166_s24 = int_to_ptr.vmem [resolvable:$true] %s165_s24 }
  0x22   : > { %s152_s25 = scalar_lea.sflag [#allocation7], %s722_s22  ;;  %s580_s26 = scalar_lea.vmem %s166_s24, 32 }
  0x23   : > { %p581_p8 = scmp.ne.s32.totalorder %s166_s24, %s580_s26  ;;  %s652_s27 = smov [#allocation6]  }
  0x24   : > { %s585_s28 = sshll.u32 %s652_s27, 4  ;;  %s586_s28 = int_to_ptr.vmem [resolvable:$false] %s585_s28 }
  0x25   : > { %p583_p13 = pnand %p581_p8, %p541_p12  ;;  %s587_s29 = scalar_lea.vmem %s586_s28, 64 }
  0x26   : > { %p588_p10 = scmp.lt.s32.totalorder %s166_s24, %s586_s28  ;;  %p589_p11 = scmp.lt.s32.totalorder %s587_s29, %s580_s26 }
  0x27   : > { %p584_p0 = pneg %p583_p13 }
  0x28   : > { %p590_p1 = por %p589_p11, %p588_p10 }
  0x2a   : > { %p591_p2 = pnand %p590_p1, %p584_p0 }
  0x2c   : > { %594 = shalt.err (!%p591_p2)
}
  0x2d   : > { %484 = dma.hbm_to_vmem [thread:$0]  (!%p731_p9), %s163_s19, 32, %s166_s24, %s152_s25  }
  0x2e   : > { %174 = sbr.rel (%p749_p6) target bundleno = 278 (0x116), region = 28  ;;  %s176_s22 = sand.u32 (!%p749_p6), 1, %s633_s10  }
  0x2f   : > { %s467_s3 = sshll.u32 (!%p749_p6), %s176_s22, 3  ;;  %s177_s4 = scalar_lea.sflag (!%p749_p6), [#allocation5], %s176_s22 }
  0x30   : > { %s180_s5 = scalar_lea.vmem (!%p749_p6), [#allocation4], %s467_s3 }
  0x33   : > { %620 = dma.done.wait (%p713_p7), %s177_s4, 128  }
  0x34   : > { %622 = vsyncadd (%p713_p7), %s177_s4, 4294967168  ;;  %s468_s6 = sshll.u32 %s176_s22, 1  ;;  %s186_s7 = scalar_lea.sflag [#allocation7], %s176_s22 }
  0x35   : > { %s771_s9 = scalar_lea.vmem [#allocation6], %s468_s6 }
  0x36   : > { %624 = dma.done.wait (%p713_p7), %s186_s7, 32  }
  0x37   : > { %626 = vsyncadd (%p713_p7), %s186_s7, 4294967264  ;;  %vm234_vm0 = vcmask 1043456   ;;  %v227_v0 = vld [vmem:[%s180_s5] sm:$0xff]  ;;  %v229_v4 = vlaneseq  ;;  %v653_v6 = vmov 839922192   ;;  %v654_v44 = vmov 0  }
  0x38   : > { %v232_v1 = vcombine.high %v227_v0, %v227_v0  ;;  %v235_v2 = vsel %vm234_vm0, %v227_v0, -inf  ;;  %v255_v7 = vunpack.c.l.s4 %v653_v6  ;;  %v228_v29 = vld [vmem:[%s771_s9] sm:$0x3]  ;;  %vm224_vm14 = vcmask 3072   ;;  %p216_p7 = scmp.lt.s32.totalorder %s641_s12, 1 }
  0x39   : > { %v236_v3 = vrot.slane %v235_v2, 4  ;;  %v230_v12 = vshrl.u32 %v229_v4, 7  ;;  %226 = vst.msk [vmem:[#allocation3] sm:$0xf] %vm224_vm14, %v654_v44  ;;  %225 = vst.msk [vmem:[#allocation2] sm:$0xf] %vm224_vm14, %v654_v44 }
  0x3a   : > { %v242_v5 = vsel %vm234_vm0, %v232_v1, -inf  ;;  %v256_v13 = vunpack.c.0.s8 %v255_v7  ;;  %s829_s12 = smov (!%p216_p7, %s641_s12), 1 }
  0x3b   : > { %v237_v8 = vmax.f32 %v235_v2, %v236_v3  ;;  %v243_v9 = vrot.slane %v242_v5, 4  ;;  %v287_v28 = vsub.s32 0, %v230_v12  ;;  %v291_v32 = vsub.s32 1, %v230_v12  ;;  %s469_s20 = sshll.u32 %s829_s12, 2 }
  0x3c   : > { %v259_v18 = vsub.s32 %v256_v13, %v230_v12  ;;  %s219_s15 = scalar_lea.vmem %s816_s2, %s469_s20 }
  0x3d   : > { %v238_v10 = vrot.slane %v237_v8, 2  ;;  %v244_v11 = vmax.f32 %v242_v5, %v243_v9  ;;  %v288_v35 = vrot.slane %v228_v29, %v287_v28  ;;  %v292_v38 = vrot.slane %v228_v29, %v291_v32 }
  0x3e   : > { %v260_v22 = vrot.slane %v230_v12, %v259_v18 }
  0x3f   : > { %v239_v14 = vmax.f32 %v237_v8, %v238_v10  ;;  %v245_v15 = vrot.slane %v244_v11, 2  ;;  %vm293_vm6 = vcmp.eq.s32.totalorder %v230_v12, %v288_v35  ;;  %vm294_vm8 = vcmp.eq.s32.totalorder %v230_v12, %v292_v38 }
  0x40   : > { %v316_v45 = vsel %vm293_vm6, 1, %v654_v44  ;;  %v317_v48 = vsel %vm294_vm8, 1, %v654_v44 }
  0x41   : > { %v240_v16 = vrot.slane %v239_v14, 1  ;;  %v246_v17 = vmax.f32 %v244_v11, %v245_v15  ;;  %v339_v15 = vld [vmem:[#allocation3] sm:$0xf] }
  0x43   : > { %v241_v19 = vmax.f32 %v239_v14, %v240_v16  ;;  %v247_v20 = vrot.slane %v246_v17, 1  ;;  %v335_v14 = vld [vmem:[#allocation2] sm:$0xf] }
  0x45   : > { %v248_v21 = vmax.f32 %v246_v17, %v247_v20 }
  0x47   : > { %v251_v23 = vcombine.low %v241_v19, %v248_v21 }
  0x49   : > { %vm253_vm1 = vcmp.eq.f32.partialorder %v227_v0, %v251_v23 }
  0x4a   : > { %v261_v24 = vsel %vm253_vm1, %v260_v22, 4 }
  0x4b   : > { %v262_v25 = vcombine.high %v261_v24, %v261_v24  ;;  %v263_v26 = vsel %vm234_vm0, %v261_v24, 2147483647 }
  0x4c   : > { %v264_v27 = vrot.slane %v263_v26, 4 }
  0x4d   : > { %v273_v30 = vsel %vm234_vm0, %v262_v25, 2147483647 }
  0x4e   : > { %vm265_vm2 = vcmp.lt.s32.totalorder %v263_v26, %v264_v27  ;;  %v274_v31 = vrot.slane %v273_v30, 4 }
  0x4f   : > { %v266_v33 = vsel %vm265_vm2, %v263_v26, %v264_v27 }
  0x50   : > { %v267_v34 = vrot.slane %v266_v33, 2  ;;  %vm275_vm3 = vcmp.lt.s32.totalorder %v273_v30, %v274_v31 }
  0x51   : > { %v276_v36 = vsel %vm275_vm3, %v273_v30, %v274_v31 }
  0x52   : > { %vm268_vm4 = vcmp.lt.s32.totalorder %v266_v33, %v267_v34  ;;  %v277_v37 = vrot.slane %v276_v36, 2 }
  0x53   : > { %v269_v39 = vsel %vm268_vm4, %v266_v33, %v267_v34 }
  0x54   : > { %v270_v40 = vrot.slane %v269_v39, 1  ;;  %vm278_vm5 = vcmp.lt.s32.totalorder %v276_v36, %v277_v37 }
  0x55   : > { %v279_v41 = vsel %vm278_vm5, %v276_v36, %v277_v37 }
  0x56   : > { %vm271_vm7 = vcmp.lt.s32.totalorder %v269_v39, %v270_v40  ;;  %v280_v42 = vrot.slane %v279_v41, 1 }
  0x57   : > { %v272_v43 = vsel %vm271_vm7, %v269_v39, %v270_v40 }
  0x58   : > { %vm281_vm9 = vcmp.lt.s32.totalorder %v279_v41, %v280_v42  ;;  %vm283_vm10 = vcmp.eq.s32.totalorder %v230_v12, %v272_v43 }
  0x59   : > { %v282_v46 = vsel %vm281_vm9, %v279_v41, %v280_v42  ;;  %v314_v47 = vsel %vm283_vm10, 1, %v654_v44  ;;  %vm295_vm11 = vmand %vm283_vm10, %vm293_vm6 }
  0x5a   : > { %vm284_vm12 = vcmp.eq.s32.totalorder %v230_v12, %v282_v46  ;;  %v318_v49 = vadd.s32 %v316_v45, %v314_v47  ;;  %v297_v50 = vsel %vm295_vm11, 1, %v654_v44 }
  0x5b   : > { %v315_v51 = vsel %vm284_vm12, 1, %v654_v44  ;;  %vm296_vm13 = vmand %vm284_vm12, %vm294_vm8  ;;  %v299_v52 = vsel %vm234_vm0, %v297_v50, 0 }
  0x5c   : > { %v319_v53 = vadd.s32 %v317_v48, %v315_v51  ;;  %v320_v54 = vsel %vm234_vm0, %v318_v49, 0  ;;  %v298_v55 = vsel %vm296_vm13, 1, %v654_v44 }
  0x5d   : > { %v300_v56 = vsel %vm234_vm0, %v298_v55, 0 }
  0x5e   : > { %v321_v57 = vsel %vm234_vm0, %v319_v53, 0  ;;  %v301_v58 = vadd.s32 %v300_v56, %v299_v52 }
  0x5f   : > { %v322_v59 = vadd.s32 %v321_v57, %v320_v54 }
  0x60   : > { %v303_v60 = vshrl.u32 %v301_v58, 16  ;;  %v302_v61 = vand.u32 65535, %v301_v58 }
  0x61   : > { %v324_v62 = vshrl.u32 %v322_v59, 16  ;;  %v323_v63 = vand.u32 65535, %v322_v59 }
  0x62   : > { %v305_v0 = vcvt.s32.f32 %v303_v60  ;;  %v304_v2 = vcvt.s32.f32 %v302_v61 }
  0x63   : > { %v326_v1 = vcvt.s32.f32 %v324_v62  ;;  %v325_v3 = vcvt.s32.f32 %v323_v63 }
  0x64   : > { %308 = vadd.xlane.f32.xlu1 %v305_v0 }
  0x65   : > { %329 = vadd.xlane.f32.xlu0 %v326_v1 }
  0x68   : > { %306 = vadd.xlane.f32.xlu1 %v304_v2 }
  0x69   : > { %327 = vadd.xlane.f32.xlu0 %v325_v3 }
  0xed   : > { %v309_v4 = vpop.xlane.xlu1 %308 }
  0xee   : > { %v330_v5 = vpop.xlane.xlu0 %329  ;;  %v311_v6 = vcvt.f32.s32 %v309_v4 }
  0xef   : > { %v332_v7 = vcvt.f32.s32 %v330_v5 }
  0xf0   : > { %v312_v8 = vshll.u32 %v311_v6, 16 }
  0xf1   : > { %v307_v9 = vpop.xlane.xlu1 %306  ;;  %v333_v12 = vshll.u32 %v332_v7, 16 }
  0xf2   : > { %v328_v10 = vpop.xlane.xlu0 %327  ;;  %v310_v11 = vcvt.f32.s32 %v307_v9 }
  0xf3   : > { %v331_v13 = vcvt.f32.s32 %v328_v10 }
  0xf4   : > { %v313_v16 = vadd.s32 %v312_v8, %v310_v11 }
  0xf5   : > { %v334_v17 = vadd.s32 %v333_v12, %v331_v13 }
  0xf6   : > { %v336_v18 = vadd.s32 %v335_v14, %v313_v16 }
  0xf7   : > { %v340_v19 = vadd.s32 %v339_v15, %v334_v17 }
  0xf8   : > { %338 = vst.msk [vmem:[#allocation2] sm:$0xf] %vm224_vm14, %v336_v18 }
  0xf9   : > { %341 = vst.msk [vmem:[#allocation3] sm:$0xf] %vm224_vm14, %v340_v19 }
  0xff   : > { %v345_v23 = vld [vmem:[#allocation2] sm:$0xf] }
 0x100   : > { %v347_v20 = vld [vmem:[#allocation3] sm:$0xf]  ;;  %v346_v24 = vcvt.s32.f32 %v345_v23 }
 0x101   : > { %v348_v21 = vcvt.s32.f32 %v347_v20 }
 0x102   : > { %v349_v25 = vmul.f32 2.0, %v346_v24 }
 0x103   : > { %v350_v22 = vadd.f32 1e-10, %v348_v21 }
 0x105   : > { %537 = vrcp.f32 %v350_v22 }
 0x112   : > { %v538_v26 = vpop.eup %537 }
 0x113   : > { %v352_v27 = vmul.f32 %v538_v26, %v349_v25 }
 0x115   : > { %353 = vst.msk [vmem:[%s219_s15] sm:$0xf] %vm224_vm14, %v352_v27 }
 0x116 PF: > { %s18_s14 = sadd.s32 1, %s649_s14   ;;  %s821_s9 = smov %s633_s10 }
 0x117   : > { %p15_p9 = scmp.ge.s32.totalorder %s18_s14, 4   ;;  %s822_s10 = smov %s637_s11 }
 0x118   : > { %s823_s11 = smov %s719_s21  ;;  %s824_s12 = smov %s645_s13 }
 0x119   : > { %s825_s13 = smov %s827_s16  ;;  %17 = sbr.rel (!%p15_p9) target bundleno = 6 (0x6), region = 89 }
 0x11e   :  { %373 = vsyncpa [#allocation5], 1 }
 0x11f   :  { %375 = vsyncpa [#allocation5 + $0x1], 1 }
 0x120   :  { %376 = vsyncpa [#allocation7], 1 }
 0x121   :  { %378 = vsyncpa [#allocation7 + $0x1], 1 }

</bundles_post_ra>
